<compile_context>
chip_gen: v7x
topology: tpu7x:2x2x1
jax: 0.10.0
libtpu: 0.0.40
codegen_flags: <defaults>
</compile_context>

<pallas_src>
import functools

import numpy as np
import jax
import jax.numpy as jnp
from jax import lax
from jax.experimental import pallas as pl
from jax.experimental.pallas import tpu as pltpu  # noqa: F401  (kept for TPU backend)

# ----------------------------- configuration --------------------------------
B = 2
H = W = 16                    # input_width = input_height
C_IMG = 2                     # channels of the raw image `input`
INPUT_CHANNELS = C_IMG + 2    # module's input_channels (includes 2 coord chans)
KERNEL_SIZES = [3, 3]
N_CHANNELS = [8, 8]
STRIDES = [1, 1]
PADDINGS = [1, 1]
HIDDEN_SIZES = [32]
LSTM_INPUT = 32               # == HIDDEN_SIZES[-1]
LSTM_SIZE = 32
OUTPUT_SIZE = 16
INIT_W = 1e-4


# ----------------------------- Pallas kernel ---------------------------------
def _fused_kernel(*refs, n_conv, n_fc, L, lstm_in, out_size, tap_slots):
    """Full RefinementNetwork forward (whole batch) in one kernel invocation.

    Conv activations are lane-dense (B*H, W*C) with column index w*C + c.
    conv stack (stride-1 'same', bias, ReLU) -> full-spatial avg-pool (folded
    into the first FC weight) -> FC stack (ReLU) -> single LSTM step ->
    last_fc / last_fc2 (identity output activation), all packed into one
    (B, 2*out + 2*L) output.
    """
    idx = 0
    x_ref = refs[idx]; idx += 1            # (B*H, W*Cin0) lane-dense conv input
    shift_ref = refs[idx]; idx += 1        # (n_shift, B*H, B*H) 0/1 row shifts
    pool_ref = refs[idx]; idx += 1         # (B, B*H) per-batch row-sum selector
    t_refs = refs[idx:idx + n_conv]; idx += n_conv   # (K, W*Cin, W*Cout) per layer
    fc_refs = refs[idx:idx + n_fc]; idx += n_fc      # fc weights (pool fused into fc0)
    wcat_ref = refs[idx]; idx += 1         # (lstm_in + L, 4L) == [wih_t ; whh_t]
    whead_ref = refs[idx]; idx += 1        # (L, 2*out)        == [w1_t | w2_t]
    bias_ref = refs[idx]; idx += 1         # (n_conv+n_fc+2, 128) packed biases
    hc0_ref = refs[idx]; idx += 1          # (B, 2L)           == [h0 | c0]
    out_ref = refs[idx]                    # (B, 2*out + 2L)   == [o1|o2|hn|cn]

    biases = bias_ref[...]
    cur = x_ref[...]

    # ---- conv stack: K lane-dense matmuls per layer (Toeplitz over W), ------
    # ---- constant shift-matrix matmul handles the kh / H boundary. ----------
    for li in range(n_conv):
        t_ref = t_refs[li]
        wc_out = t_ref.shape[2]
        acc = None
        for kh, slot in enumerate(tap_slots[li]):
            src = cur if slot < 0 else jnp.dot(
                shift_ref[slot], cur, preferred_element_type=jnp.float32)
            tap = jnp.dot(src, t_ref[kh], preferred_element_type=jnp.float32)
            acc = tap if acc is None else acc + tap
        cur = jnp.maximum(acc + biases[li:li + 1, :wc_out], 0.0)

    # ---- AvgPool2d(kernel_size=input_width) == full-spatial mean ------------
    # Row-sum per batch via a constant selector matmul; the 1/(H*W) factor and
    # the per-w channel sum are folded into the first FC weight.
    s = jnp.dot(pool_ref[...], cur, preferred_element_type=jnp.float32)  # (B, W*C_last)

    # ---- FC stack (ReLU) -----------------------------------------------------
    h = s
    for fi in range(n_fc):
        w = fc_refs[fi][...]
        b = biases[n_conv + fi:n_conv + fi + 1, :w.shape[1]]
        h = jnp.maximum(jnp.dot(h, w, preferred_element_type=jnp.float32) + b, 0.0)

    # ---- single LSTM step (seq_len == 1), PyTorch gate order: i, f, g, o ----
    hc0 = hc0_ref[...]
    h0 = hc0[:, :L]
    c0 = hc0[:, L:2 * L]
    wcat = wcat_ref[...]
    b_g = biases[n_conv + n_fc:n_conv + n_fc + 1, :4 * L]     # bih + bhh (pre-added)
    gates = (jnp.dot(h, wcat[:lstm_in, :], preferred_element_type=jnp.float32)
             + jnp.dot(h0, wcat[lstm_in:, :], preferred_element_type=jnp.float32)
             + b_g)
    i_g = jax.nn.sigmoid(gates[:, 0 * L:1 * L])
    f_g = jax.nn.sigmoid(gates[:, 1 * L:2 * L])
    g_g = jnp.tanh(gates[:, 2 * L:3 * L])
    o_g = jax.nn.sigmoid(gates[:, 3 * L:4 * L])
    c_new = f_g * c0 + i_g * g_g
    h_new = o_g * jnp.tanh(c_new)

    # ---- both output heads in ONE matmul, identity output activation --------
    b_h = biases[n_conv + n_fc + 1:n_conv + n_fc + 2, :2 * out_size]
    heads = jnp.dot(h_new, whead_ref[...], preferred_element_type=jnp.float32) + b_h

    # single packed output buffer: [out1 | out2 | h_n | c_n]
    out_ref[:, :2 * out_size] = heads
    out_ref[:, 2 * out_size:2 * out_size + L] = h_new
    out_ref[:, 2 * out_size + L:2 * out_size + 2 * L] = c_new


# ----------------------------- parameter packing ------------------------------
def pack_params(params, batch):
    """One-time repack of raw module params into kernel-friendly fused arrays."""
    n_conv = len(params["conv_ws"])
    n_fc = len(params["fc_ws"])
    assert n_fc >= 1  # TODO(synk): n_fc == 0 (pool feeding LSTM directly) not wired here.
    BH = batch * H
    pk = {}

    # coords pre-transposed to NHWC (H, W, 2) so the wrapper never transposes them
    pk["coords_hwc"] = jnp.transpose(params["coords"][0], (1, 2, 0))

    # per-kh block-Toeplitz conv weights over the W (lane) axis; the 'same'
    # W-boundary zeros are baked in here.
    toeplitz = []
    for wc, pad in zip(params["conv_ws"], PADDINGS):
        K, _, cin, cout = wc.shape
        w_np = np.asarray(wc)
        T = np.zeros((K, W * cin, W * cout), np.float32)
        for kh in range(K):
            for w_out in range(W):
                for kw in range(K):
                    w_in = w_out + kw - pad
                    if 0 <= w_in < W:
                        T[kh, w_in * cin:(w_in + 1) * cin,
                          w_out * cout:(w_out + 1) * cout] = w_np[kh, kw]
        toeplitz.append(jnp.asarray(T))
    pk["toeplitz"] = toeplitz

    # constant 0/1 row-shift matrices for the kh (H-direction) taps; 'same'
    # H-boundary and batch boundaries are baked in as zero rows.
    dh_set = sorted({kh - p for Ksz, p in zip(KERNEL_SIZES, PADDINGS)
                     for kh in range(Ksz) if kh != p})
    dh_to_slot = {dh: i for i, dh in enumerate(dh_set)}
    shifts = np.zeros((max(len(dh_set), 1), BH, BH), np.float32)
    for dh, slot in dh_to_slot.items():
        for r in range(BH):
            if 0 <= (r % H) + dh < H:
                shifts[slot, r, r + dh] = 1.0
    pk["shifts"] = jnp.asarray(shifts)
    pk["tap_slots"] = tuple(
        tuple(-1 if kh == p else dh_to_slot[kh - p] for kh in range(Ksz))
        for Ksz, p in zip(KERNEL_SIZES, PADDINGS))

    # per-batch row-sum selector for the full-spatial average pool
    pool_sel = np.zeros((batch, BH), np.float32)
    for bi in range(batch):
        pool_sel[bi, bi * H:(bi + 1) * H] = 1.0
    pk["pool_sel"] = jnp.asarray(pool_sel)

    # FC weights; the avg-pool (1/(H*W) scale + sum over w) is folded into fc0
    w0 = params["fc_ws"][0]                                  # (c_last, hidden0)
    fc_ws = [jnp.tile(w0, (W, 1)) / float(H * W)]            # (W*c_last, hidden0)
    fc_ws.extend(params["fc_ws"][1:])
    pk["fc_ws"] = fc_ws

    # fused LSTM gate weight and fused output-head weight
    pk["w_cat"] = jnp.concatenate([params["wih_t"], params["whh_t"]], axis=0)
    pk["w_heads"] = jnp.concatenate([params["w1_t"], params["w2_t"]], axis=1)

    # one packed bias matrix: conv rows (tiled per w), fc rows, lstm gate row
    # (bih + bhh pre-added), heads row ([b1 | b2]).
    lane = max([W * c for c in N_CHANNELS] + list(HIDDEN_SIZES)
               + [4 * LSTM_SIZE, 2 * OUTPUT_SIZE])
    bias = np.zeros((n_conv + n_fc + 2, lane), np.float32)
    for li, bc in enumerate(params["conv_bs"]):
        cout = bc.shape[0]
        bias[li, :W * cout] = np.tile(np.asarray(bc), W)
    for fi, bf in enumerate(params["fc_bs"]):
        bf = np.asarray(bf).reshape(-1)
        bias[n_conv + fi, :bf.shape[0]] = bf
    bias[n_conv + n_fc, :4 * LSTM_SIZE] = np.asarray(
        params["bih"] + params["bhh"]).reshape(-1)
    bias[n_conv + n_fc + 1, :2 * OUTPUT_SIZE] = np.concatenate(
        [np.asarray(params["b1"]).reshape(-1), np.asarray(params["b2"]).reshape(-1)])
    pk["bias_pack"] = jnp.asarray(bias)
    return pk


# ----------------------------- wrapper ----------------------------------------
def refinement_forward(pk, x_nchw, hidden1, hidden2):
    """Mirrors RefinementNetwork.forward (extra_input=None, add_fc_input=None)."""
    Bn = x_nchw.shape[0]

    # lane-dense (B*H, W*Cin) conv input: NCHW -> NHWC, append precomputed NHWC
    # coord channels, flatten (W, C) into the lane dim.  No padding needed.
    xi = jnp.transpose(x_nchw, (0, 2, 3, 1))                           # (B,H,W,C_img)
    coords = jnp.broadcast_to(pk["coords_hwc"][None], (Bn, H, W, 2))
    x_ld = jnp.concatenate([xi, coords], axis=-1).reshape(Bn * H, W * INPUT_CHANNELS)

    h0 = hidden1 if hidden1.ndim == 2 else hidden1[0]
    c0 = hidden2 if hidden2.ndim == 2 else hidden2[0]
    hc0 = jnp.concatenate([h0, c0], axis=1)                            # (B, 2L)

    n_conv = len(pk["toeplitz"])
    n_fc = len(pk["fc_ws"])
    kernel = functools.partial(_fused_kernel, n_conv=n_conv, n_fc=n_fc,
                               L=LSTM_SIZE, lstm_in=LSTM_INPUT,
                               out_size=OUTPUT_SIZE, tap_slots=pk["tap_slots"])
    args = ([x_ld, pk["shifts"], pk["pool_sel"]] + list(pk["toeplitz"])
            + list(pk["fc_ws"])
            + [pk["w_cat"], pk["w_heads"], pk["bias_pack"], hc0])

    O, L = OUTPUT_SIZE, LSTM_SIZE
    packed = pl.pallas_call(
        kernel,
        out_shape=jax.ShapeDtypeStruct((Bn, 2 * O + 2 * L), jnp.float32),
    )(*args)

    out1 = packed[:, :O]
    out2 = packed[:, O:2 * O]
    hn = packed[:, 2 * O:2 * O + L]
    cn = packed[:, 2 * O + L:2 * O + 2 * L]
    return out1, out2, hn[None], cn[None]                 # hidden returned as (1, B, L)


# ----------------------------- reference (plain JAX) -------------------------
def reference_forward(params, x_nchw, hidden1, hidden2):
    Bn = x_nchw.shape[0]
    coords = jnp.broadcast_to(params["coords"], (Bn, 2, H, W))
    hi = jnp.concatenate([x_nchw, coords], axis=1)
    hi = jnp.transpose(hi, (0, 2, 3, 1))
    for wc, bc, s, p in zip(params["conv_ws"], params["conv_bs"], STRIDES, PADDINGS):
        hi = lax.conv_general_dilated(
            hi, wc, (s, s), [(p, p), (p, p)],
            dimension_numbers=("NHWC", "HWIO", "NHWC")) + bc
        hi = jnp.maximum(hi, 0.0)
    h = jnp.mean(hi, axis=(1, 2))
    for w, b in zip(params["fc_ws"], params["fc_bs"]):
        h = jnp.maximum(h @ w + b, 0.0)
    h0 = hidden1 if hidden1.ndim == 2 else hidden1[0]
    c0 = hidden2 if hidden2.ndim == 2 else hidden2[0]
    L = LSTM_SIZE
    gates = h @ params["wih_t"] + params["bih"] + h0 @ params["whh_t"] + params["bhh"]
    i = jax.nn.sigmoid(gates[:, :L])
    f = jax.nn.sigmoid(gates[:, L:2 * L])
    g = jnp.tanh(gates[:, 2 * L:3 * L])
    o = jax.nn.sigmoid(gates[:, 3 * L:4 * L])
    cn = f * c0 + i * g
    hn = o * jnp.tanh(cn)
    out1 = hn @ params["w1_t"] + params["b1"]
    out2 = hn @ params["w2_t"] + params["b2"]
    return out1, out2, hn[None], cn[None]


# ----------------------------- parameter init --------------------------------
def init_params(key):
    keys = iter(jax.random.split(key, 32))
    params = {}

    # coords buffer, exactly as in __init__ (x varies along width, y along height)
    xcoords = jnp.tile(jnp.linspace(-1.0, 1.0, W)[None, :], (H, 1))
    ycoords = jnp.tile(jnp.linspace(-1.0, 1.0, H)[:, None], (1, W))
    params["coords"] = jnp.stack([xcoords, ycoords], 0)[None].astype(jnp.float32)

    # conv layers: xavier_uniform_ weights, zero bias (HWIO layout)
    conv_ws, conv_bs = [], []
    cin = INPUT_CHANNELS
    for cout, K in zip(N_CHANNELS, KERNEL_SIZES):
        fan_in, fan_out = cin * K * K, cout * K * K
        bound = (6.0 / (fan_in + fan_out)) ** 0.5
        conv_ws.append(jax.random.uniform(next(keys), (K, K, cin, cout),
                                          jnp.float32, -bound, bound))
        conv_bs.append(jnp.zeros((cout,), jnp.float32))
        cin = cout
    params["conv_ws"], params["conv_bs"] = conv_ws, conv_bs

    # fc layers: uniform(-init_w, init_w)
    fc_ws, fc_bs = [], []
    fin = cin  # pooled features = C_last (1x1 spatial), added_fc_input_size = 0
    for hsz in HIDDEN_SIZES:
        fc_ws.append(jax.random.uniform(next(keys), (fin, hsz), jnp.float32,
                                        -INIT_W, INIT_W))
        fc_bs.append(jax.random.uniform(next(keys), (1, hsz), jnp.float32,
                                        -INIT_W, INIT_W))
        fin = hsz
    params["fc_ws"], params["fc_bs"] = fc_ws, fc_bs

    # LSTM (PyTorch default init: U(-1/sqrt(L), 1/sqrt(L))), stored transposed
    L = LSTM_SIZE
    s = 1.0 / (L ** 0.5)
    params["wih_t"] = jax.random.uniform(next(keys), (LSTM_INPUT, 4 * L),
                                         jnp.float32, -s, s)
    params["whh_t"] = jax.random.uniform(next(keys), (L, 4 * L),
                                         jnp.float32, -s, s)
    params["bih"] = jax.random.uniform(next(keys), (1, 4 * L), jnp.float32, -s, s)
    params["bhh"] = jax.random.uniform(next(keys), (1, 4 * L), jnp.float32, -s, s)

    # last_fc / last_fc2 (PyTorch default Linear init)
    params["w1_t"] = jax.random.uniform(next(keys), (L, OUTPUT_SIZE),
                                        jnp.float32, -s, s)
    params["b1"] = jax.random.uniform(next(keys), (1, OUTPUT_SIZE),
                                      jnp.float32, -s, s)
    params["w2_t"] = jax.random.uniform(next(keys), (L, OUTPUT_SIZE),
                                        jnp.float32, -s, s)
    params["b2"] = jax.random.uniform(next(keys), (1, OUTPUT_SIZE),
                                      jnp.float32, -s, s)
    return params


# ----------------------------- main -------------------------------------------
if __name__ == "__main__":
    key = jax.random.PRNGKey(0)
    kp, kx, khd, kcd = jax.random.split(key, 4)
    params = init_params(kp)
    packed_params = pack_params(params, B)

    x = jax.random.normal(kx, (B, C_IMG, H, W), jnp.float32)          # NCHW input
    hidden1 = jax.random.normal(khd, (1, B, LSTM_SIZE), jnp.float32)  # (1, B, L)
    hidden2 = jax.random.normal(kcd, (1, B, LSTM_SIZE), jnp.float32)

    fwd = jax.jit(functools.partial(refinement_forward, packed_params))
    out1, out2, hn, cn = fwd(x, hidden1, hidden2)
    jax.block_until_ready((out1, out2, hn, cn))

    r1, r2, rh, rc = reference_forward(params, x, hidden1, hidden2)
    assert out1.shape == (B, OUTPUT_SIZE) and out2.shape == (B, OUTPUT_SIZE)
    assert hn.shape == (1, B, LSTM_SIZE) and cn.shape == (1, B, LSTM_SIZE)
    for a, r in [(out1, r1), (out2, r2), (hn, rh), (cn, rc)]:
        assert jnp.allclose(a, r, rtol=1e-3, atol=1e-4), "mismatch vs reference"

    print("KERNEL_OK")
</pallas_src>

<mosaic_0001>
module attributes {stable_mosaic.version = 11 : i64} {
  func.func @_fused_kernel(%arg0: memref<32x64xf32, #tpu.memory_space<vmem>>, %arg1: memref<2x32x32xf32, #tpu.memory_space<vmem>>, %arg2: memref<2x32xf32, #tpu.memory_space<vmem>>, %arg3: memref<3x64x128xf32, #tpu.memory_space<vmem>>, %arg4: memref<3x128x128xf32, #tpu.memory_space<vmem>>, %arg5: memref<128x32xf32, #tpu.memory_space<vmem>>, %arg6: memref<64x128xf32, #tpu.memory_space<vmem>>, %arg7: memref<32x32xf32, #tpu.memory_space<vmem>>, %arg8: memref<5x128xf32, #tpu.memory_space<vmem>>, %arg9: memref<2x64xf32, #tpu.memory_space<vmem>>, %arg10: memref<2x96xf32, #tpu.memory_space<vmem>>) attributes {dimension_semantics = [], scalar_prefetch = 0 : i64, scratch_operands = 0 : i64, tpu.core_type = #tpu.core_type<tc>} {
    %c0 = arith.constant 0 : index
    %c0_0 = arith.constant 0 : index
    %0 = vector.load %arg8[%c0, %c0_0] : memref<5x128xf32, #tpu.memory_space<vmem>>, vector<5x128xf32>
    %c0_1 = arith.constant 0 : index
    %c0_2 = arith.constant 0 : index
    %1 = vector.load %arg0[%c0_1, %c0_2] : memref<32x64xf32, #tpu.memory_space<vmem>>, vector<32x64xf32>
    %c0_3 = arith.constant 0 : index
    %c0_4 = arith.constant 0 : index
    %c0_5 = arith.constant 0 : index
    %2 = vector.load %arg1[%c0_3, %c0_4, %c0_5] : memref<2x32x32xf32, #tpu.memory_space<vmem>>, vector<1x32x32xf32>
    %3 = vector.shape_cast %2 : vector<1x32x32xf32> to vector<32x32xf32>
    %cst = arith.constant dense<0.000000e+00> : vector<32x64xf32>
    %4 = tpu.matmul %3, %1, %cst {dimension_numbers = #tpu.dot_dimension_numbers<[1], [0], [0], [1], [0, 0, 1, 1], [], []>} : vector<32x32xf32>, vector<32x64xf32>, vector<32x64xf32> -> vector<32x64xf32>
    %c0_6 = arith.constant 0 : index
    %c0_7 = arith.constant 0 : index
    %c0_8 = arith.constant 0 : index
    %5 = vector.load %arg3[%c0_6, %c0_7, %c0_8] : memref<3x64x128xf32, #tpu.memory_space<vmem>>, vector<1x64x128xf32>
    %6 = vector.shape_cast %5 : vector<1x64x128xf32> to vector<64x128xf32>
    %cst_9 = arith.constant dense<0.000000e+00> : vector<32x128xf32>
    %7 = tpu.matmul %4, %6, %cst_9 {dimension_numbers = #tpu.dot_dimension_numbers<[1], [0], [0], [1], [0, 0, 1, 1], [], []>} : vector<32x64xf32>, vector<64x128xf32>, vector<32x128xf32> -> vector<32x128xf32>
    %c1 = arith.constant 1 : index
    %c0_10 = arith.constant 0 : index
    %c0_11 = arith.constant 0 : index
    %8 = vector.load %arg3[%c1, %c0_10, %c0_11] : memref<3x64x128xf32, #tpu.memory_space<vmem>>, vector<1x64x128xf32>
    %9 = vector.shape_cast %8 : vector<1x64x128xf32> to vector<64x128xf32>
    %cst_12 = arith.constant dense<0.000000e+00> : vector<32x128xf32>
    %10 = tpu.matmul %1, %9, %cst_12 {dimension_numbers = #tpu.dot_dimension_numbers<[1], [0], [0], [1], [0, 0, 1, 1], [], []>} : vector<32x64xf32>, vector<64x128xf32>, vector<32x128xf32> -> vector<32x128xf32>
    %11 = arith.addf %7, %10 : vector<32x128xf32>
    %c1_13 = arith.constant 1 : index
    %c0_14 = arith.constant 0 : index
    %c0_15 = arith.constant 0 : index
    %12 = vector.load %arg1[%c1_13, %c0_14, %c0_15] : memref<2x32x32xf32, #tpu.memory_space<vmem>>, vector<1x32x32xf32>
    %13 = vector.shape_cast %12 : vector<1x32x32xf32> to vector<32x32xf32>
    %cst_16 = arith.constant dense<0.000000e+00> : vector<32x64xf32>
    %14 = tpu.matmul %13, %1, %cst_16 {dimension_numbers = #tpu.dot_dimension_numbers<[1], [0], [0], [1], [0, 0, 1, 1], [], []>} : vector<32x32xf32>, vector<32x64xf32>, vector<32x64xf32> -> vector<32x64xf32>
    %c2 = arith.constant 2 : index
    %c0_17 = arith.constant 0 : index
    %c0_18 = arith.constant 0 : index
    %15 = vector.load %arg3[%c2, %c0_17, %c0_18] : memref<3x64x128xf32, #tpu.memory_space<vmem>>, vector<1x64x128xf32>
    %16 = vector.shape_cast %15 : vector<1x64x128xf32> to vector<64x128xf32>
    %cst_19 = arith.constant dense<0.000000e+00> : vector<32x128xf32>
    %17 = tpu.matmul %14, %16, %cst_19 {dimension_numbers = #tpu.dot_dimension_numbers<[1], [0], [0], [1], [0, 0, 1, 1], [], []>} : vector<32x64xf32>, vector<64x128xf32>, vector<32x128xf32> -> vector<32x128xf32>
    %18 = arith.addf %11, %17 : vector<32x128xf32>
    %19 = vector.extract_strided_slice %0 {offsets = [0, 0], sizes = [1, 128], strides = [1, 1]} : vector<5x128xf32> to vector<1x128xf32>
    %20 = vector.broadcast %19 : vector<1x128xf32> to vector<32x128xf32>
    %21 = arith.addf %18, %20 : vector<32x128xf32>
    %cst_20 = arith.constant 0.000000e+00 : f32
    %22 = vector.broadcast %cst_20 : f32 to vector<32x128xf32>
    %23 = arith.maximumf %21, %22 : vector<32x128xf32>
    %c0_21 = arith.constant 0 : index
    %c0_22 = arith.constant 0 : index
    %c0_23 = arith.constant 0 : index
    %24 = vector.load %arg1[%c0_21, %c0_22, %c0_23] : memref<2x32x32xf32, #tpu.memory_space<vmem>>, vector<1x32x32xf32>
    %25 = vector.shape_cast %24 : vector<1x32x32xf32> to vector<32x32xf32>
    %cst_24 = arith.constant dense<0.000000e+00> : vector<32x128xf32>
    %26 = tpu.matmul %25, %23, %cst_24 {dimension_numbers = #tpu.dot_dimension_numbers<[1], [0], [0], [1], [0, 0, 1, 1], [], []>} : vector<32x32xf32>, vector<32x128xf32>, vector<32x128xf32> -> vector<32x128xf32>
    %c0_25 = arith.constant 0 : index
    %c0_26 = arith.constant 0 : index
    %c0_27 = arith.constant 0 : index
    %27 = vector.load %arg4[%c0_25, %c0_26, %c0_27] : memref<3x128x128xf32, #tpu.memory_space<vmem>>, vector<1x128x128xf32>
    %28 = vector.shape_cast %27 : vector<1x128x128xf32> to vector<128x128xf32>
    %cst_28 = arith.constant dense<0.000000e+00> : vector<32x128xf32>
    %29 = tpu.matmul %26, %28, %cst_28 {dimension_numbers = #tpu.dot_dimension_numbers<[1], [0], [0], [1], [0, 0, 1, 1], [], []>} : vector<32x128xf32>, vector<128x128xf32>, vector<32x128xf32> -> vector<32x128xf32>
    %c1_29 = arith.constant 1 : index
    %c0_30 = arith.constant 0 : index
    %c0_31 = arith.constant 0 : index
    %30 = vector.load %arg4[%c1_29, %c0_30, %c0_31] : memref<3x128x128xf32, #tpu.memory_space<vmem>>, vector<1x128x128xf32>
    %31 = vector.shape_cast %30 : vector<1x128x128xf32> to vector<128x128xf32>
    %cst_32 = arith.constant dense<0.000000e+00> : vector<32x128xf32>
    %32 = tpu.matmul %23, %31, %cst_32 {dimension_numbers = #tpu.dot_dimension_numbers<[1], [0], [0], [1], [0, 0, 1, 1], [], []>} : vector<32x128xf32>, vector<128x128xf32>, vector<32x128xf32> -> vector<32x128xf32>
    %33 = arith.addf %29, %32 : vector<32x128xf32>
    %c1_33 = arith.constant 1 : index
    %c0_34 = arith.constant 0 : index
    %c0_35 = arith.constant 0 : index
    %34 = vector.load %arg1[%c1_33, %c0_34, %c0_35] : memref<2x32x32xf32, #tpu.memory_space<vmem>>, vector<1x32x32xf32>
    %35 = vector.shape_cast %34 : vector<1x32x32xf32> to vector<32x32xf32>
    %cst_36 = arith.constant dense<0.000000e+00> : vector<32x128xf32>
    %36 = tpu.matmul %35, %23, %cst_36 {dimension_numbers = #tpu.dot_dimension_numbers<[1], [0], [0], [1], [0, 0, 1, 1], [], []>} : vector<32x32xf32>, vector<32x128xf32>, vector<32x128xf32> -> vector<32x128xf32>
    %c2_37 = arith.constant 2 : index
    %c0_38 = arith.constant 0 : index
    %c0_39 = arith.constant 0 : index
    %37 = vector.load %arg4[%c2_37, %c0_38, %c0_39] : memref<3x128x128xf32, #tpu.memory_space<vmem>>, vector<1x128x128xf32>
    %38 = vector.shape_cast %37 : vector<1x128x128xf32> to vector<128x128xf32>
    %cst_40 = arith.constant dense<0.000000e+00> : vector<32x128xf32>
    %39 = tpu.matmul %36, %38, %cst_40 {dimension_numbers = #tpu.dot_dimension_numbers<[1], [0], [0], [1], [0, 0, 1, 1], [], []>} : vector<32x128xf32>, vector<128x128xf32>, vector<32x128xf32> -> vector<32x128xf32>
    %40 = arith.addf %33, %39 : vector<32x128xf32>
    %41 = vector.extract_strided_slice %0 {offsets = [1, 0], sizes = [1, 128], strides = [1, 1]} : vector<5x128xf32> to vector<1x128xf32>
    %42 = vector.broadcast %41 : vector<1x128xf32> to vector<32x128xf32>
    %43 = arith.addf %40, %42 : vector<32x128xf32>
    %cst_41 = arith.constant 0.000000e+00 : f32
    %44 = vector.broadcast %cst_41 : f32 to vector<32x128xf32>
    %45 = arith.maximumf %43, %44 : vector<32x128xf32>
    %c0_42 = arith.constant 0 : index
    %c0_43 = arith.constant 0 : index
    %46 = vector.load %arg2[%c0_42, %c0_43] : memref<2x32xf32, #tpu.memory_space<vmem>>, vector<2x32xf32>
    %cst_44 = arith.constant dense<0.000000e+00> : vector<2x128xf32>
    %47 = tpu.matmul %46, %45, %cst_44 {dimension_numbers = #tpu.dot_dimension_numbers<[1], [0], [0], [1], [0, 0, 1, 1], [], []>} : vector<2x32xf32>, vector<32x128xf32>, vector<2x128xf32> -> vector<2x128xf32>
    %c0_45 = arith.constant 0 : index
    %c0_46 = arith.constant 0 : index
    %48 = vector.load %arg5[%c0_45, %c0_46] : memref<128x32xf32, #tpu.memory_space<vmem>>, vector<128x32xf32>
    %49 = vector.extract_strided_slice %0 {offsets = [2, 0], sizes = [1, 32], strides = [1, 1]} : vector<5x128xf32> to vector<1x32xf32>
    %cst_47 = arith.constant dense<0.000000e+00> : vector<2x32xf32>
    %50 = tpu.matmul %47, %48, %cst_47 {dimension_numbers = #tpu.dot_dimension_numbers<[1], [0], [0], [1], [0, 0, 1, 1], [], []>} : vector<2x128xf32>, vector<128x32xf32>, vector<2x32xf32> -> vector<2x32xf32>
    %51 = vector.broadcast %49 : vector<1x32xf32> to vector<2x32xf32>
    %52 = arith.addf %50, %51 : vector<2x32xf32>
    %cst_48 = arith.constant 0.000000e+00 : f32
    %53 = vector.broadcast %cst_48 : f32 to vector<2x32xf32>
    %54 = arith.maximumf %52, %53 : vector<2x32xf32>
    %c0_49 = arith.constant 0 : index
    %c0_50 = arith.constant 0 : index
    %55 = vector.load %arg9[%c0_49, %c0_50] : memref<2x64xf32, #tpu.memory_space<vmem>>, vector<2x64xf32>
    %56 = vector.extract_strided_slice %55 {offsets = [0, 0], sizes = [2, 32], strides = [1, 1]} : vector<2x64xf32> to vector<2x32xf32>
    %57 = vector.extract_strided_slice %55 {offsets = [0, 32], sizes = [2, 32], strides = [1, 1]} : vector<2x64xf32> to vector<2x32xf32>
    %c0_51 = arith.constant 0 : index
    %c0_52 = arith.constant 0 : index
    %58 = vector.load %arg6[%c0_51, %c0_52] : memref<64x128xf32, #tpu.memory_space<vmem>>, vector<64x128xf32>
    %59 = vector.extract_strided_slice %0 {offsets = [3, 0], sizes = [1, 128], strides = [1, 1]} : vector<5x128xf32> to vector<1x128xf32>
    %60 = vector.extract_strided_slice %58 {offsets = [0, 0], sizes = [32, 128], strides = [1, 1]} : vector<64x128xf32> to vector<32x128xf32>
    %cst_53 = arith.constant dense<0.000000e+00> : vector<2x128xf32>
    %61 = tpu.matmul %54, %60, %cst_53 {dimension_numbers = #tpu.dot_dimension_numbers<[1], [0], [0], [1], [0, 0, 1, 1], [], []>} : vector<2x32xf32>, vector<32x128xf32>, vector<2x128xf32> -> vector<2x128xf32>
    %62 = vector.extract_strided_slice %58 {offsets = [32, 0], sizes = [32, 128], strides = [1, 1]} : vector<64x128xf32> to vector<32x128xf32>
    %cst_54 = arith.constant dense<0.000000e+00> : vector<2x128xf32>
    %63 = tpu.matmul %56, %62, %cst_54 {dimension_numbers = #tpu.dot_dimension_numbers<[1], [0], [0], [1], [0, 0, 1, 1], [], []>} : vector<2x32xf32>, vector<32x128xf32>, vector<2x128xf32> -> vector<2x128xf32>
    %64 = arith.addf %61, %63 : vector<2x128xf32>
    %65 = vector.broadcast %59 : vector<1x128xf32> to vector<2x128xf32>
    %66 = arith.addf %64, %65 : vector<2x128xf32>
    %67 = vector.extract_strided_slice %66 {offsets = [0, 0], sizes = [2, 32], strides = [1, 1]} : vector<2x128xf32> to vector<2x32xf32>
    %68 = arith.negf %67 : vector<2x32xf32>
    %69 = math.exp %68 : vector<2x32xf32>
    %cst_55 = arith.constant 1.000000e+00 : f32
    %70 = vector.broadcast %cst_55 : f32 to vector<2x32xf32>
    %71 = arith.addf %70, %69 : vector<2x32xf32>
    %72 = arith.divf %70, %71 : vector<2x32xf32>
    %73 = vector.extract_strided_slice %66 {offsets = [0, 32], sizes = [2, 32], strides = [1, 1]} : vector<2x128xf32> to vector<2x32xf32>
    %74 = arith.negf %73 : vector<2x32xf32>
    %75 = math.exp %74 : vector<2x32xf32>
    %cst_56 = arith.constant 1.000000e+00 : f32
    %76 = vector.broadcast %cst_56 : f32 to vector<2x32xf32>
    %77 = arith.addf %76, %75 : vector<2x32xf32>
    %78 = arith.divf %76, %77 : vector<2x32xf32>
    %79 = vector.extract_strided_slice %66 {offsets = [0, 64], sizes = [2, 32], strides = [1, 1]} : vector<2x128xf32> to vector<2x32xf32>
    %80 = math.tanh %79 : vector<2x32xf32>
    %81 = vector.extract_strided_slice %66 {offsets = [0, 96], sizes = [2, 32], strides = [1, 1]} : vector<2x128xf32> to vector<2x32xf32>
    %82 = arith.negf %81 : vector<2x32xf32>
    %83 = math.exp %82 : vector<2x32xf32>
    %cst_57 = arith.constant 1.000000e+00 : f32
    %84 = vector.broadcast %cst_57 : f32 to vector<2x32xf32>
    %85 = arith.addf %84, %83 : vector<2x32xf32>
    %86 = arith.divf %84, %85 : vector<2x32xf32>
    %87 = arith.mulf %78, %57 : vector<2x32xf32>
    %88 = arith.mulf %72, %80 : vector<2x32xf32>
    %89 = arith.addf %87, %88 : vector<2x32xf32>
    %90 = math.tanh %89 : vector<2x32xf32>
    %91 = arith.mulf %86, %90 : vector<2x32xf32>
    %92 = vector.extract_strided_slice %0 {offsets = [4, 0], sizes = [1, 32], strides = [1, 1]} : vector<5x128xf32> to vector<1x32xf32>
    %c0_58 = arith.constant 0 : index
    %c0_59 = arith.constant 0 : index
    %93 = vector.load %arg7[%c0_58, %c0_59] : memref<32x32xf32, #tpu.memory_space<vmem>>, vector<32x32xf32>
    %cst_60 = arith.constant dense<0.000000e+00> : vector<2x32xf32>
    %94 = tpu.matmul %91, %93, %cst_60 {dimension_numbers = #tpu.dot_dimension_numbers<[1], [0], [0], [1], [0, 0, 1, 1], [], []>} : vector<2x32xf32>, vector<32x32xf32>, vector<2x32xf32> -> vector<2x32xf32>
    %95 = vector.broadcast %92 : vector<1x32xf32> to vector<2x32xf32>
    %96 = arith.addf %94, %95 : vector<2x32xf32>
    %c0_61 = arith.constant 0 : index
    %c0_62 = arith.constant 0 : index
    %97 = vector.load %arg10[%c0_61, %c0_62] : memref<2x96xf32, #tpu.memory_space<vmem>>, vector<2x32xf32>
    tpu.vector_store %arg10[%c0_61, %c0_62], %96 {strides = array<i32>} : memref<2x96xf32, #tpu.memory_space<vmem>>, vector<2x32xf32>,
    %c0_63 = arith.constant 0 : index
    %c32 = arith.constant 32 : index
    %98 = vector.load %arg10[%c0_63, %c32] : memref<2x96xf32, #tpu.memory_space<vmem>>, vector<2x32xf32>
    tpu.vector_store %arg10[%c0_63, %c32], %91 {strides = array<i32>} : memref<2x96xf32, #tpu.memory_space<vmem>>, vector<2x32xf32>,
    %c0_64 = arith.constant 0 : index
    %c64 = arith.constant 64 : index
    %99 = vector.load %arg10[%c0_64, %c64] : memref<2x96xf32, #tpu.memory_space<vmem>>, vector<2x32xf32>
    tpu.vector_store %arg10[%c0_64, %c64], %89 {strides = array<i32>} : memref<2x96xf32, #tpu.memory_space<vmem>>, vector<2x32xf32>,
    return
  }
}

</mosaic_0001>

<bundles_post_ra>
// kernel: refinement_forward.1
= control target key start
LH: loop header
LB: loop body
LE: loop exit
PB: predicated region body
PF: predicated region fallthrough
CT: control target
= control target key end

     0   :  { %15 = vsyncpa [#allocation3], 0  ;;  %s2378_s13 = smov [#allocation2]   ;;  %s2920_s0 = inlined_call_operand.vmem [shape: f32[32,64], index: 0, kind: input, shape index: {}]   ;;  %s2921_s1 = inlined_call_operand.vmem [shape: f32[2,32,32], index: 1, kind: input, shape index: {}]   ;;  %s2922_s2 = inlined_call_operand.vmem [shape: f32[2,32], index: 2, kind: input, shape index: {}]   ;;  %s2923_s3 = inlined_call_operand.vmem [shape: f32[3,64,128], index: 3, kind: input, shape index: {}]   ;;  %s2924_s4 = inlined_call_operand.vmem [shape: f32[3,128,128], index: 4, kind: input, shape index: {}]   ;;  %s2925_s5 = inlined_call_operand.vmem [shape: f32[128,32], index: 5, kind: input, shape index: {}]   ;;  %s2926_s6 = inlined_call_operand.vmem [shape: f32[64,128], index: 6, kind: input, shape index: {}]   ;;  %s2927_s7 = inlined_call_operand.hbm [shape: f32[32,32], index: 7, kind: input, shape index: {}]   ;;  %s2928_s8 = inlined_call_operand.vmem [shape: f32[5,128], index: 8, kind: input, shape index: {}]   ;;  %s2929_s9 = inlined_call_operand.vmem [shape: f32[2,64], index: 9, kind: input, shape index: {}]   ;;  %s2930_s10 = inlined_call_operand.vmem [shape: f32[2,96], index: 10, kind: output, shape index: {}]  }
   0x1   :  { %s35_s14 = sshll.u32 %s2378_s13, 4  ;;  %s2354_s17 = scalar_lea.hbm %s2927_s7, 512  ;;  %s36_s14 = int_to_ptr.vmem [resolvable:$true] %s35_s14 }
   0x2   :  { %p2355_p0 = scmp.ne.s32.totalorder %s2927_s7, %s2354_s17  ;;  %p2358_p1 = scmp.lt.u32.totalorder %s2354_s17, %s2927_s7 }
   0x4   :  { %p2360_p2 = pnand %p2358_p1, %p2355_p0 }
   0x6   :  { %2363 = shalt.err (!%p2360_p2)
}
   0x7   :  { %s2364_s22 = scalar_lea.vmem %s36_s14, 512  ;;  %p2369_p4 = scmp.lt.s32.totalorder %s36_s14, %s36_s14 }
   0x8   :  { %p2365_p3 = scmp.ne.s32.totalorder %s36_s14, %s2364_s22  ;;  %p2370_p5 = scmp.lt.s32.totalorder %s2364_s22, %s2364_s22 }
   0xa   :  { %p2371_p6 = por %p2370_p5, %p2369_p4 }
   0xc   :  { %p2372_p7 = pnand %p2371_p6, %p2365_p3 }
   0xe   :  { %2375 = shalt.err (!%p2372_p7)
}
   0xf   :  { %s2379_s23 = smov 128   ;;  %s2380_s24 = smov 8  }
  0x10   :  { %41 = dma.hbm_to_vmem [thread:$0]  %s2927_s7, 512, %s36_s14, [#allocation3], %s2379_s23, %s2379_s23, %s2380_s24  }
  0x11   :  { %2376 = dma.done.wait [#allocation3], 512  }
  0x12   :  { %2377 = vsyncadd [#allocation3], 4294966784  ;;  %vm173_vm0 = vcmask 523264   ;;  %vm58_vm1 = vcmask 261120   ;;  %v50_v0 = vld [vmem:[%s2920_s0] sm:$0xff]  ;;  %v51_v1 = vld [vmem:[%s2920_s0 + $0x8] sm:$0xff]  ;;  %v580_v58 = vlaneseq }
  0x13   :  { %v52_v2 = vld [vmem:[%s2920_s0 + $0x10] sm:$0xff]  ;;  %v2098_v3 = vpack.c.bf16 %v51_v1, %v50_v0  ;;  %v2465_v4 = vld [vmem:[%s2920_s0 + $0x18] sm:$0xff]  ;;  %v54_v5 = vld [vmem:[%s2921_s1] sm:$0xff]  ;;  %1813 = vmatprep.mubr.msk.f32.mxu1 %vm173_vm0, %v50_v0  ;;  %vm2382_vm2 = vmmov 0   ;;  %vm1515_vm3 = vcmask 254976   ;;  %vm1520_vm4 = vcmask 517376  }
  0x14   :  { %v2102_v6 = vpack.c.bf16 %v2465_v4, %v52_v2  ;;  %1791 = vmatprep.mubr.msk.f32.mxu0 %vm58_vm1, %v54_v5  ;;  %v1537_v7 = vld [vmem:[%s2923_s3 + $0x40] sm:$0xff]  ;;  %v1538_v8 = vld [vmem:[%s2923_s3 + $0x48] sm:$0xff]  ;;  %v1539_v9 = vld [vmem:[%s2923_s3 + $0x50] sm:$0xff]  ;;  %v2609_v59 = vshrl.u32 %v580_v58, 7  ;;  %vm1526_vm5 = vcmask 779776  }
  0x15   :  { %2099 = vmatprep.subr.bf16.mxu0 %v2098_v3  ;;  %v2106_v10 = vpack.c.bf16 %v1538_v8, %v1537_v7  ;;  %v1540_v11 = vld [vmem:[%s2923_s3 + $0x58] sm:$0xff]  ;;  %v1541_v13 = vld [vmem:[%s2923_s3 + $0x60] sm:$0xff]  ;;  %v1542_v14 = vld [vmem:[%s2923_s3 + $0x68] sm:$0xff] }
  0x16   :  { %2101 = vmatpush3.bf16.msra.mxu0 %v2098_v3  ;;  %v2110_v12 = vpack.c.bf16 %v1540_v11, %v1539_v9  ;;  %v2494_v15 = vld [vmem:[%s2921_s1 + $0x8] sm:$0xff]  ;;  %v2499_v16 = vld [vmem:[%s2921_s1 + $0x10] sm:$0xff]  ;;  %v2114_v17 = vpack.c.bf16 %v1542_v14, %v1541_v13  ;;  %v1544_v19 = vld [vmem:[%s2923_s3 + $0x78] sm:$0xff]  ;;  %v582_v60 = vsub.s32 0, %v2609_v59 }
  0x17   :  { %2103 = vmatprep.subr.bf16.mxu0 %v2102_v6  ;;  %2107 = vmatprep.subr.bf16.mxu1 %v2106_v10  ;;  %v1543_v18 = vld [vmem:[%s2923_s3 + $0x70] sm:$0xff]  ;;  %v2514_v20 = vld [vmem:[%s2921_s1 + $0x18] sm:$0xff]  ;;  %v2519_v21 = vld [vmem:[%s2921_s1 + $0x20] sm:$0xff] }
  0x18   :  { %2109 = vmatpush3.bf16.msra.mxu1 %v2106_v10  ;;  %v2118_v22 = vpack.c.bf16 %v1544_v19, %v1543_v18  ;;  %v156_v23 = vld [vmem:[%s2923_s3] sm:$0xff]  ;;  %v157_v24 = vld [vmem:[%s2923_s3 + $0x8] sm:$0xff]  ;;  %v2539_v26 = vld [vmem:[%s2921_s1 + $0x30] sm:$0xff] }
  0x19   :  { %2111 = vmatprep.subr.bf16.mxu1 %v2110_v12  ;;  %v2534_v25 = vld [vmem:[%s2921_s1 + $0x28] sm:$0xff]  ;;  %v2122_v27 = vpack.c.bf16 %v157_v24, %v156_v23  ;;  %v158_v28 = vld [vmem:[%s2923_s3 + $0x10] sm:$0xff]  ;;  %v159_v29 = vld [vmem:[%s2923_s3 + $0x18] sm:$0xff] }
  0x1a   :  { %2105 = vmatpush3.bf16.msra.mxu0 %v2102_v6  ;;  %v2554_v30 = vld [vmem:[%s2921_s1 + $0x38] sm:$0xff]  ;;  %v2126_v31 = vpack.c.bf16 %v159_v29, %v158_v28  ;;  %v160_v32 = vld [vmem:[%s2923_s3 + $0x20] sm:$0xff]  ;;  %v161_v33 = vld [vmem:[%s2923_s3 + $0x28] sm:$0xff] }
  0x1b   :  { %2139 = vmatprep.subr.bf16.mxu0 %v2098_v3  ;;  %v2130_v34 = vpack.c.bf16 %v161_v33, %v160_v32  ;;  %v162_v35 = vld [vmem:[%s2923_s3 + $0x30] sm:$0xff]  ;;  %v163_v36 = vld [vmem:[%s2923_s3 + $0x38] sm:$0xff]  ;;  %v1561_v38 = vld [vmem:[%s2923_s3 + $0x80] sm:$0xff] }
  0x1c   :  { %2113 = vmatpush3.bf16.msra.mxu1 %v2110_v12  ;;  %v2134_v37 = vpack.c.bf16 %v163_v36, %v162_v35  ;;  %v1562_v39 = vld [vmem:[%s2923_s3 + $0x88] sm:$0xff]  ;;  %v1563_v41 = vld [vmem:[%s2923_s3 + $0x90] sm:$0xff]  ;;  %v1564_v42 = vld [vmem:[%s2923_s3 + $0x98] sm:$0xff] }
  0x1d   :  { %1792 = vmatmul.mubr.msk.f32.vlgmr.msra.gmra.mrb[0].mxu0 %vm58_vm1, %v2494_v15  ;;  %2115 = vmatprep.subr.bf16.mxu1 %v2114_v17  ;;  %v2146_v40 = vpack.c.bf16 %v1562_v39, %v1561_v38  ;;  %v2150_v45 = vpack.c.bf16 %v1564_v42, %v1563_v41  ;;  %v1565_v46 = vld [vmem:[%s2923_s3 + $0xa0] sm:$0xff]  ;;  %v1566_v47 = vld [vmem:[%s2923_s3 + $0xa8] sm:$0xff]  ;;  %v1567_v51 = vld [vmem:[%s2923_s3 + $0xb0] sm:$0xff] }
  0x1e   :  { %2141 = vmatpush3.bf16.msra.mxu0 %v2098_v3  ;;  %1794 = vmatprep.mubr.msk.f32.mxu0 %vm58_vm1, %v2499_v16  ;;  %v2154_v50 = vpack.c.bf16 %v1566_v47, %v1565_v46  ;;  %v1568_v52 = vld [vmem:[%s2923_s3 + $0xb8] sm:$0xff]  ;;  %v2615_v61 = vld [vmem:[%s2928_s8] sm:$0x1f]  ;;  %v1578_v12 = vld [vmem:[%s2924_s4 + $0x88] sm:$0xff] }
  0x1f   :  { %2143 = vmatprep.subr.bf16.mxu0 %v2102_v6  ;;  %v2158_v54 = vpack.c.bf16 %v1568_v52, %v1567_v51  ;;  %v583_v62 = vrot.slane %v2615_v61, %v582_v60  ;;  %v1577_v11 = vld [vmem:[%s2924_s4 + $0x80] sm:$0xff]  ;;  %v1579_v18 = vld [vmem:[%s2924_s4 + $0x90] sm:$0xff]  ;;  %v1580_v19 = vld [vmem:[%s2924_s4 + $0x98] sm:$0xff] }
  0x20   :  { %2117 = vmatpush3.bf16.msra.mxu1 %v2114_v17  ;;  %v2170_v17 = vpack.c.bf16 %v1578_v12, %v1577_v11  ;;  %v1582_v23 = vld [vmem:[%s2924_s4 + $0xa8] sm:$0xff]  ;;  %v1588_v29 = vld [vmem:[%s2924_s4 + $0xd8] sm:$0xff]  ;;  %v683_v46 = vld [vmem:[%s2924_s4 + $0x30] sm:$0xff] }
  0x21   :  { %1795 = vmatmul.mubr.msk.f32.gmra.mrb[2].mxu0 %vm58_vm1, %v2514_v20  ;;  %2119 = vmatprep.subr.bf16.mxu1 %v2118_v22  ;;  %v1590_v32 = vld [vmem:[%s2924_s4 + $0xe8] sm:$0xff]  ;;  %v1592_v35 = vld [vmem:[%s2924_s4 + $0xf8] sm:$0xff]  ;;  %v687_v52 = vld [vmem:[%s2924_s4 + $0x50] sm:$0xff] }
  0x22   :  { %2145 = vmatpush3.bf16.msra.mxu0 %v2102_v6  ;;  %1849 = vmatprep.mubr.msk.f32.mxu0 %vm58_vm1, %v2519_v21  ;;  %v678_v38 = vld [vmem:[%s2924_s4 + $0x8] sm:$0xff]  ;;  %v680_v41 = vld [vmem:[%s2924_s4 + $0x18] sm:$0xff]  ;;  %v691_v58 = vld [vmem:[%s2924_s4 + $0x70] sm:$0xff] }
  0x23   :  { %v684_v47 = vld [vmem:[%s2924_s4 + $0x38] sm:$0xff] }
  0x24   :  { %2121 = vmatpush3.bf16.msra.mxu1 %v2118_v22  ;;  %v1581_v22 = vld [vmem:[%s2924_s4 + $0xa0] sm:$0xff]  ;;  %v692_v60 = vld [vmem:[%s2924_s4 + $0x78] sm:$0xff] }
  0x25   :  { %1850 = vmatmul.mubr.msk.f32.vlgmr.msra.gmra.mrb[4].mxu0 %vm58_vm1, %v2534_v25  ;;  %2123 = vmatprep.subr.bf16.mxu1 %v2122_v27  ;;  %v2178_v24 = vpack.c.bf16 %v1582_v23, %v1581_v22  ;;  %v1605_v22 = vld [vmem:[%s2924_s4 + $0x140] sm:$0xff]  ;;  %v1606_v23 = vld [vmem:[%s2924_s4 + $0x148] sm:$0xff] }
  0x26   :  { %1852 = vmatprep.mubr.msk.f32.mxu0 %vm58_vm1, %v2539_v26 }
  0x27   :  { %1814 = vmatmul.mubr.msk.f32.vlgmr.msra.gmra.mrb[0].mxu1 %vm173_vm0, %v51_v1 }
  0x28   :  { %2125 = vmatpush3.bf16.msra.mxu1 %v2122_v27  ;;  %1816 = vmatprep.mubr.msk.f32.mxu1 %vm173_vm0, %v52_v2  ;;  %v1583_v27 = vld [vmem:[%s2924_s4 + $0xb0] sm:$0xff] }
  0x29   :  { %1853 = vmatmul.mubr.msk.f32.gmra.mrb[6].mxu0 %vm58_vm1, %v2554_v30  ;;  %2127 = vmatprep.subr.bf16.mxu1 %v2126_v31 }
  0x2a   :  { %1885 = vmatprep.mubr.msk.f32.mxu0 %vm58_vm1, %v54_v5 }
  0x2b   :  { %1817 = vmatmul.mubr.msk.f32.gmra.mrb[2].mxu1 %vm173_vm0, %v2465_v4 }
  0x2c   :  { %2129 = vmatpush3.bf16.msra.mxu1 %v2126_v31  ;;  %v1589_v31 = vld [vmem:[%s2924_s4 + $0xe0] sm:$0xff] }
  0x2d   :  { %2131 = vmatprep.subr.bf16.mxu1 %v2130_v34  ;;  %v2194_v33 = vpack.c.bf16 %v1590_v32, %v1589_v31  ;;  %v2381_v31 = vmov 0.0|0.0   ;;  %v2383_v32 = vmov 0.0  }
  0x30   :  { %2133 = vmatpush3.bf16.msra.mxu1 %v2130_v34  ;;  %v1591_v34 = vld [vmem:[%s2924_s4 + $0xf0] sm:$0xff] }
  0x31   :  { %2135 = vmatprep.subr.bf16.mxu1 %v2134_v37  ;;  %v2198_v36 = vpack.c.bf16 %v1592_v35, %v1591_v34 }
  0x34   :  { %2137 = vmatpush3.bf16.msra.mxu1 %v2134_v37  ;;  %v677_v37 = vld [vmem:[%s2924_s4] sm:$0xff] }
  0x35   :  { %2147 = vmatprep.subr.bf16.mxu1 %v2146_v40  ;;  %v2202_v39 = vpack.c.bf16 %v678_v38, %v677_v37 }
  0xf0   :  { %v1793_v43 = vpop.f32.mrb[0].mxu0 }
  0xf1   :  { %v137_v44 = vpop.f32.mrb[1].mxu0 }
  0xf2   :  { %1835 = vmatprep.mubr.msk.f32.mxu1 %vm173_vm0, %v137_v44  ;;  %v682_v44 = vld [vmem:[%s2924_s4 + $0x28] sm:$0xff] }
  0xf3   :  { %1836 = vmatmul.mubr.msk.f32.vlgmr.msra.gmra.mrb[0].mxu1 %vm173_vm0, %v1793_v43  ;;  %v681_v43 = vld [vmem:[%s2924_s4 + $0x20] sm:$0xff] }
  0xf4   :  { %2149 = vmatpush3.bf16.msra.mxu1 %v2146_v40  ;;  %v1796_v48 = vpop.f32.mrb[2].mxu0  ;;  %v679_v40 = vld [vmem:[%s2924_s4 + $0x10] sm:$0xff] }
  0xf5   :  { %2151 = vmatprep.subr.bf16.mxu1 %v2150_v45  ;;  %v147_v49 = vpop.f32.mrb[3].mxu0  ;;  %v2206_v42 = vpack.c.bf16 %v680_v41, %v679_v40 }
  0xf6   :  { %1838 = vmatprep.mubr.msk.f32.mxu1 %vm173_vm0, %v147_v49  ;;  %v685_v49 = vld [vmem:[%s2924_s4 + $0x40] sm:$0xff] }
  0xf7   :  { %1839 = vmatmul.mubr.msk.f32.gmra.mrb[2].mxu1 %vm173_vm0, %v1796_v48  ;;  %v2214_v48 = vpack.c.bf16 %v684_v47, %v683_v46 }
  0xf8   :  { %2153 = vmatpush3.bf16.msra.mxu1 %v2150_v45  ;;  %v1851_v53 = vpop.f32.mrb[4].mxu0  ;;  %v2210_v45 = vpack.c.bf16 %v682_v44, %v681_v43 }
  0xf9   :  { %2155 = vmatprep.subr.bf16.mxu1 %v2154_v50  ;;  %v451_v55 = vpop.f32.mrb[5].mxu0 }
  0xfa   :  { %1871 = vmatprep.mubr.msk.f32.mxu1 %vm173_vm0, %v451_v55  ;;  %v689_v55 = vld [vmem:[%s2924_s4 + $0x60] sm:$0xff] }
  0xfc   :  { %2157 = vmatpush3.bf16.msra.mxu1 %v2154_v50  ;;  %v1854_v56 = vpop.f32.mrb[6].mxu0  ;;  %v686_v50 = vld [vmem:[%s2924_s4 + $0x48] sm:$0xff] }
  0xfd   :  { %2159 = vmatprep.subr.bf16.mxu1 %v2158_v54  ;;  %v461_v57 = vpop.f32.mrb[7].mxu0  ;;  %v2218_v51 = vpack.c.bf16 %v686_v50, %v685_v49  ;;  %v1158_v49 = vld [vmem:[%s2925_s5 + $0x8] sm:$0xff] }
 0x100   :  { %2161 = vmatpush3.bf16.msra.mxu1 %v2158_v54 }
 0x103   :  { %1872 = vmatmul.mubr.msk.f32.vlgmr.msra.gmra.mrb[0].mxu1 %vm173_vm0, %v1851_v53  ;;  %v688_v53 = vld [vmem:[%s2924_s4 + $0x58] sm:$0xff] }
 0x104   :  { %1874 = vmatprep.mubr.msk.f32.mxu1 %vm173_vm0, %v461_v57  ;;  %v2222_v54 = vpack.c.bf16 %v688_v53, %v687_v52  ;;  %v1159_v53 = vld [vmem:[%s2925_s5 + $0x10] sm:$0xff] }
 0x107   :  { %1875 = vmatmul.mubr.msk.f32.gmra.mrb[2].mxu1 %vm173_vm0, %v1854_v56  ;;  %v690_v56 = vld [vmem:[%s2924_s4 + $0x68] sm:$0xff] }
 0x108   :  { %1975 = vmatprep.mubr.msk.f32.mxu1 %vm58_vm1, %v2519_v21  ;;  %v2174_v21 = vpack.c.bf16 %v1580_v19, %v1579_v18  ;;  %v2226_v57 = vpack.c.bf16 %v690_v56, %v689_v55  ;;  %v1603_v18 = vld [vmem:[%s2924_s4 + $0x130] sm:$0xff]  ;;  %v1604_v19 = vld [vmem:[%s2924_s4 + $0x138] sm:$0xff]  ;;  %v1161_v56 = vld [vmem:[%s2925_s5 + $0x20] sm:$0xff] }
 0x1d6   :  { %v1873_v63 = vpop.f32.mrb[0].mxu1 }
 0x1d7   :  { %v2618_v0 = vadd.f32 %v1873_v63, %v583_v62  ;;  %v557_v1 = vpop.f32.mrb[1].mxu1  ;;  %v1597_v63 = vld [vmem:[%s2924_s4 + $0x100] sm:$0xff] }
 0x1d8   :  { %v584_v2 = vadd.f32 %v583_v62, %v557_v1 }
 0x1d9   :  { %v589_v3 = vmax.f32 %v2618_v0, 0.0  ;;  %v1598_v0 = vld [vmem:[%s2924_s4 + $0x108] sm:$0xff] }
 0x1da   :  { %v588_v4 = vmax.f32 %v584_v2, 0.0  ;;  %v1876_v5 = vpop.f32.mrb[2].mxu1  ;;  %v2242_v1 = vpack.c.bf16 %v1598_v0, %v1597_v63  ;;  %v1599_v2 = vld [vmem:[%s2924_s4 + $0x110] sm:$0xff]  ;;  %v1165_v0 = vld [vmem:[%s2925_s5 + $0x40] sm:$0xff] }
 0x1db   :  { %v2621_v6 = vadd.f32 %v1876_v5, %v583_v62  ;;  %v567_v7 = vpop.f32.mrb[3].mxu1 }
 0x1dc   :  { %v2162_v8 = vpack.c.bf16 %v589_v3, %v588_v4  ;;  %v2625_v9 = vadd.f32 %v583_v62, %v567_v7  ;;  %v2230_v62 = vpack.c.bf16 %v692_v60, %v691_v58  ;;  %v1163_v60 = vld [vmem:[%s2925_s5 + $0x30] sm:$0xff] }
 0x1dd   :  { %v591_v10 = vmax.f32 %v2621_v6, 0.0 }
 0x1de   :  { %v590_v13 = vmax.f32 %v2625_v9, 0.0  ;;  %2163 = vmatprep.subr.bf16.mxu0 %v2162_v8  ;;  %2235 = vmatprep.subr.bf16.mxu1 %v2162_v8  ;;  %v1601_v9 = vld [vmem:[%s2924_s4 + $0x120] sm:$0xff] }
 0x1df   :  { %2165 = vmatpush3.bf16.msra.mxu0 %v2162_v8  ;;  %2237 = vmatpush3.bf16.msra.mxu1 %v2162_v8 }
 0x1e0   :  { %v2166_v14 = vpack.c.bf16 %v591_v10, %v590_v13 }
 0x1e2   :  { %2167 = vmatprep.subr.bf16.mxu0 %v2166_v14  ;;  %2239 = vmatprep.subr.bf16.mxu1 %v2166_v14 }
 0x1e3   :  { %2169 = vmatpush3.bf16.msra.mxu0 %v2166_v14  ;;  %2241 = vmatpush3.bf16.msra.mxu1 %v2166_v14 }
 0x1e4   :  { %2171 = vmatprep.subr.bf16.mxu0 %v2170_v17  ;;  %2274 = vmatprep.subr.bf16.mxu1 %v2381_v31 }
 0x1e6   :  { %1886 = vmatmul.mubr.msk.f32.vlgmr.msra.gmra.mrb[8].mxu0 %vm58_vm1, %v2494_v15  ;;  %1976 = vmatmul.mubr.msk.f32.vlgmr.msra.gmra.mrb[4].mxu1 %vm58_vm1, %v2534_v25  ;;  %v1584_v15 = vld [vmem:[%s2924_s4 + $0xb8] sm:$0xff]  ;;  %v1585_v25 = vld [vmem:[%s2924_s4 + $0xc0] sm:$0xff] }
 0x1e7   :  { %2173 = vmatpush3.bf16.msra.mxu0 %v2170_v17  ;;  %1888 = vmatprep.mubr.msk.f32.mxu0 %vm58_vm1, %v2499_v16  ;;  %v2182_v16 = vpack.c.bf16 %v1584_v15, %v1583_v27  ;;  %v1607_v27 = vld [vmem:[%s2924_s4 + $0x150] sm:$0xff]  ;;  %v1608_v15 = vld [vmem:[%s2924_s4 + $0x158] sm:$0xff] }
 0x1e8   :  { %2175 = vmatprep.subr.bf16.mxu0 %v2174_v21  ;;  %1978 = vmatprep.mubr.msk.f32.mxu1 %vm58_vm1, %v2539_v26  ;;  %v1586_v26 = vld [vmem:[%s2924_s4 + $0xc8] sm:$0xff] }
 0x1e9   :  { %v2186_v28 = vpack.c.bf16 %v1586_v26, %v1585_v25  ;;  %v1609_v25 = vld [vmem:[%s2924_s4 + $0x160] sm:$0xff]  ;;  %v1610_v26 = vld [vmem:[%s2924_s4 + $0x168] sm:$0xff] }
 0x1ea   :  { %1889 = vmatmul.mubr.msk.f32.gmra.mrb[10].mxu0 %vm58_vm1, %v2514_v20  ;;  %1979 = vmatmul.mubr.msk.f32.gmra.mrb[6].mxu1 %vm58_vm1, %v2554_v30  ;;  %v1587_v20 = vld [vmem:[%s2924_s4 + $0xd0] sm:$0xff] }
 0x1eb   :  { %2177 = vmatpush3.bf16.msra.mxu0 %v2174_v21  ;;  %1923 = vmatprep.mubr.f32.mxu0 %v588_v4  ;;  %v2190_v30 = vpack.c.bf16 %v1588_v29, %v1587_v20  ;;  %v2254_v21 = vpack.c.bf16 %v1604_v19, %v1603_v18  ;;  %v1611_v20 = vld [vmem:[%s2924_s4 + $0x170] sm:$0xff]  ;;  %v1612_v29 = vld [vmem:[%s2924_s4 + $0x178] sm:$0xff] }
 0x1ec   :  { %2179 = vmatprep.subr.bf16.mxu0 %v2178_v24  ;;  %2027 = vmatprep.mubr.msk.f32.mxu1 %vm2382_vm2, %v2383_v32  ;;  %v1256_v18 = vld [vmem:[%s2926_s6 + $0x38] sm:$0xff] }
 0x1ef   :  { %2181 = vmatpush3.bf16.msra.mxu0 %v2178_v24  ;;  %v2258_v24 = vpack.c.bf16 %v1606_v23, %v1605_v22  ;;  %v1249_v23 = vld [vmem:[%s2926_s6] sm:$0xff] }
 0x1f0   :  { %2183 = vmatprep.subr.bf16.mxu0 %v2182_v16 }
 0x1f3   :  { %2185 = vmatpush3.bf16.msra.mxu0 %v2182_v16  ;;  %v2262_v16 = vpack.c.bf16 %v1608_v15, %v1607_v27  ;;  %v1248_v27 = vld [vmem:[%s2929_s9] sm:$0x3]  ;;  %s2385_s9 = smov 32  }
 0x1f4   :  { %2187 = vmatprep.subr.bf16.mxu0 %v2186_v28 }
 0x1f7   :  { %2189 = vmatpush3.bf16.msra.mxu0 %v2186_v28  ;;  %v2266_v28 = vpack.c.bf16 %v1610_v26, %v1609_v25  ;;  %v1252_v25 = vld [vmem:[%s2926_s6 + $0x18] sm:$0xff] }
 0x1f8   :  { %2191 = vmatprep.subr.bf16.mxu0 %v2190_v30 }
 0x1fb   :  { %2193 = vmatpush3.bf16.msra.mxu0 %v2190_v30  ;;  %v2270_v30 = vpack.c.bf16 %v1612_v29, %v1611_v20 }
 0x1fc   :  { %2195 = vmatprep.subr.bf16.mxu0 %v2194_v33 }
 0x1ff   :  { %2197 = vmatpush3.bf16.msra.mxu0 %v2194_v33  ;;  %v1073_v33 = vsub.s32 1, %v2609_v59 }
 0x200   :  { %2199 = vmatprep.subr.bf16.mxu0 %v2198_v36 }
 0x201   :  { %v1074_v34 = vrot.slane %v2615_v61, %v1073_v33 }
 0x203   :  { %2201 = vmatpush3.bf16.msra.mxu0 %v2198_v36 }
 0x204   :  { %2203 = vmatprep.subr.bf16.mxu0 %v2202_v39 }
 0x206   :  { %1924 = vmatmul.mubr.f32.vlgmr.msra.gmra.mrb[12].mxu0 %v589_v3  ;;  %v1600_v3 = vld [vmem:[%s2924_s4 + $0x118] sm:$0xff] }
 0x207   :  { %1926 = vmatprep.mubr.f32.mxu0 %v590_v13  ;;  %2205 = vmatpush3.bf16.msra.mxu0 %v2202_v39  ;;  %v2246_v7 = vpack.c.bf16 %v1600_v3, %v1599_v2  ;;  %v1167_v3 = vld [vmem:[%s2925_s5 + $0x50] sm:$0xff] }
 0x208   :  { %2207 = vmatprep.subr.bf16.mxu0 %v2206_v42 }
 0x20a   :  { %1927 = vmatmul.mubr.f32.gmra.mrb[14].mxu0 %v591_v10  ;;  %v1602_v10 = vld [vmem:[%s2924_s4 + $0x128] sm:$0xff] }
 0x20b   :  { %2209 = vmatpush3.bf16.msra.mxu0 %v2206_v42  ;;  %v2250_v13 = vpack.c.bf16 %v1602_v10, %v1601_v9  ;;  %v1171_v9 = vld [vmem:[%s2925_s5 + $0x70] sm:$0xff]  ;;  %v1172_v10 = vld [vmem:[%s2925_s5 + $0x78] sm:$0xff] }
 0x20c   :  { %2211 = vmatprep.subr.bf16.mxu0 %v2210_v45 }
 0x20f   :  { %2213 = vmatpush3.bf16.msra.mxu0 %v2210_v45 }
 0x210   :  { %2215 = vmatprep.subr.bf16.mxu0 %v2214_v48 }
 0x213   :  { %2217 = vmatpush3.bf16.msra.mxu0 %v2214_v48  ;;  %v1157_v48 = vld [vmem:[%s2925_s5] sm:$0xff] }
 0x214   :  { %2219 = vmatprep.subr.bf16.mxu0 %v2218_v51  ;;  %v2281_v52 = vpack.c.bf16 %v1158_v49, %v1157_v48 }
 0x217   :  { %2221 = vmatpush3.bf16.msra.mxu0 %v2218_v51  ;;  %v1083_v51 = vld [vmem:[%s2922_s2] sm:$0x3] }
 0x218   :  { %2223 = vmatprep.subr.bf16.mxu0 %v2222_v54 }
 0x21b   :  { %2225 = vmatpush3.bf16.msra.mxu0 %v2222_v54  ;;  %v1160_v54 = vld [vmem:[%s2925_s5 + $0x18] sm:$0xff] }
 0x21c   :  { %2227 = vmatprep.subr.bf16.mxu0 %v2226_v57  ;;  %v2284_v55 = vpack.c.bf16 %v1160_v54, %v1159_v53  ;;  %v1433_v53 = vld [vmem:[#allocation2 + $0x8] sm:$0xff]  ;;  %v1434_v54 = vld [vmem:[#allocation2 + $0x10] sm:$0xff] }
 0x21f   :  { %2229 = vmatpush3.bf16.msra.mxu0 %v2226_v57  ;;  %v1162_v57 = vld [vmem:[%s2925_s5 + $0x28] sm:$0xff] }
 0x220   :  { %2231 = vmatprep.subr.bf16.mxu0 %v2230_v62  ;;  %v2287_v58 = vpack.c.bf16 %v1162_v57, %v1161_v56  ;;  %v1435_v56 = vld [vmem:[#allocation2 + $0x18] sm:$0xff] }
 0x221   :  { %v2320_v57 = vpack.c.bf16 %v1435_v56, %v1434_v54 }
 0x223   :  { %2233 = vmatpush3.bf16.msra.mxu0 %v2230_v62  ;;  %v1164_v62 = vld [vmem:[%s2925_s5 + $0x38] sm:$0xff] }
 0x224   :  { %2243 = vmatprep.subr.bf16.mxu0 %v2242_v1  ;;  %v2290_v63 = vpack.c.bf16 %v1164_v62, %v1163_v60 }
 0x2b9   :  { %v1887_v4 = vpop.f32.mrb[8].mxu0  ;;  %v1977_v5 = vpop.f32.mrb[4].mxu1 }
 0x2ba   :  { %v658_v6 = vpop.f32.mrb[9].mxu0  ;;  %v946_v8 = vpop.f32.mrb[5].mxu1 }
 0x2bb   :  { %1961 = vmatprep.mubr.f32.mxu0 %v658_v6  ;;  %v1169_v6 = vld [vmem:[%s2925_s5 + $0x60] sm:$0xff] }
 0x2bc   :  { %1962 = vmatmul.mubr.f32.vlgmr.msra.gmra.mrb[12].mxu0 %v1887_v4  ;;  %v1168_v4 = vld [vmem:[%s2925_s5 + $0x58] sm:$0xff] }
 0x2bd   :  { %2245 = vmatpush3.bf16.msra.mxu0 %v2242_v1  ;;  %v1890_v11 = vpop.f32.mrb[10].mxu0  ;;  %v1980_v12 = vpop.f32.mrb[6].mxu1  ;;  %v1166_v1 = vld [vmem:[%s2925_s5 + $0x48] sm:$0xff] }
 0x2be   :  { %2247 = vmatprep.subr.bf16.mxu0 %v2246_v7  ;;  %v668_v14 = vpop.f32.mrb[11].mxu0  ;;  %v956_v17 = vpop.f32.mrb[7].mxu1  ;;  %v2293_v2 = vpack.c.bf16 %v1166_v1, %v1165_v0  ;;  %v1438_v0 = vsub.s32 4, %v2609_v59 }
 0x2bf   :  { %1964 = vmatprep.mubr.f32.mxu0 %v668_v14 }
 0x2c0   :  { %1965 = vmatmul.mubr.f32.gmra.mrb[14].mxu0 %v1890_v11  ;;  %v2302_v11 = vpack.c.bf16 %v1172_v10, %v1171_v9  ;;  %v1439_v1 = vrot.slane %v2615_v61, %v1438_v0 }
 0x2c1   :  { %2249 = vmatpush3.bf16.msra.mxu0 %v2246_v7  ;;  %2013 = vmatprep.mubr.f32.mxu0 %v946_v8  ;;  %v1170_v7 = vld [vmem:[%s2925_s5 + $0x68] sm:$0xff] }
 0x2c2   :  { %2251 = vmatprep.subr.bf16.mxu0 %v2250_v13  ;;  %v2299_v8 = vpack.c.bf16 %v1170_v7, %v1169_v6 }
 0x2c5   :  { %2253 = vmatpush3.bf16.msra.mxu0 %v2250_v13  ;;  %v1254_v13 = vld [vmem:[%s2926_s6 + $0x28] sm:$0xff] }
 0x2c6   :  { %2255 = vmatprep.subr.bf16.mxu0 %v2254_v21 }
 0x2c9   :  { %2257 = vmatpush3.bf16.msra.mxu0 %v2254_v21 }
 0x2ca   :  { %2259 = vmatprep.subr.bf16.mxu0 %v2258_v24 }
 0x2cd   :  { %2261 = vmatpush3.bf16.msra.mxu0 %v2258_v24  ;;  %v1250_v24 = vld [vmem:[%s2926_s6 + $0x8] sm:$0xff] }
 0x2ce   :  { %2263 = vmatprep.subr.bf16.mxu0 %v2262_v16  ;;  %v2311_v15 = vpack.c.bf16 %v1250_v24, %v1249_v23 }
 0x2d1   :  { %2265 = vmatpush3.bf16.msra.mxu0 %v2262_v16  ;;  %v1251_v16 = vld [vmem:[%s2926_s6 + $0x10] sm:$0xff] }
 0x2d2   :  { %2267 = vmatprep.subr.bf16.mxu0 %v2266_v28  ;;  %v2314_v26 = vpack.c.bf16 %v1252_v25, %v1251_v16 }
 0x2d5   :  { %2269 = vmatpush3.bf16.msra.mxu0 %v2266_v28  ;;  %v1175_v28 = vsub.s32 2, %v2609_v59 }
 0x2d6   :  { %2271 = vmatprep.subr.bf16.mxu0 %v2270_v30 }
 0x2d7   :  { %v1176_v20 = vrot.slane %v2615_v61, %v1175_v28 }
 0x2d9   :  { %2273 = vmatpush3.bf16.msra.mxu0 %v2270_v30 }
 0x2dc   :  { %2014 = vmatmul.mubr.f32.vlgmr.msra.gmra.mrb[12].mxu0 %v1977_v5  ;;  %v2296_v5 = vpack.c.bf16 %v1168_v4, %v1167_v3 }
 0x2dd   :  { %2016 = vmatprep.mubr.f32.mxu0 %v956_v17  ;;  %v1255_v17 = vld [vmem:[%s2926_s6 + $0x30] sm:$0xff] }
 0x2de   :  { %v2308_v22 = vpack.c.bf16 %v1256_v18, %v1255_v17 }
 0x2e0   :  { %2017 = vmatmul.mubr.f32.gmra.mrb[14].mxu0 %v1980_v12  ;;  %v1253_v12 = vld [vmem:[%s2926_s6 + $0x20] sm:$0xff]  ;;  %s2384_s6 = smov 64  }
 0x2e1   :  { %v2305_v14 = vpack.c.bf16 %v1254_v13, %v1253_v12 }
 0x3af   :  { %v2015_v35 = vpop.f32.mrb[12].mxu0 }
 0x3b0   :  { %v1076_v36 = vadd.f32 %v2015_v35, %v1074_v34  ;;  %v1048_v37 = vpop.f32.mrb[13].mxu0 }
 0x3b1   :  { %v1075_v38 = vadd.f32 %v1074_v34, %v1048_v37  ;;  %v1405_v37 = vsub.s32 3, %v2609_v59 }
 0x3b2   :  { %v1080_v39 = vmax.f32 %v1076_v36, 0.0 }
 0x3b3   :  { %v1079_v40 = vmax.f32 %v1075_v38, 0.0  ;;  %v2018_v41 = vpop.f32.mrb[14].mxu0  ;;  %v1406_v38 = vrot.slane %v2615_v61, %v1405_v37 }
 0x3b4   :  { %v1078_v42 = vadd.f32 %v2018_v41, %v1074_v34  ;;  %v1058_v43 = vpop.f32.mrb[15].mxu0 }
 0x3b5   :  { %v2275_v44 = vpack.c.bf16 %v1080_v39, %v1079_v40  ;;  %v1077_v45 = vadd.f32 %v1074_v34, %v1058_v43 }
 0x3b6   :  { %v1082_v46 = vmax.f32 %v1078_v42, 0.0 }
 0x3b7   :  { %v1081_v47 = vmax.f32 %v1077_v45, 0.0  ;;  %2276 = vmatpush3.bf16.msra.mxu1 %v2275_v44 }
 0x3b8   :  { %2277 = vmatprep.subr.bf16.mxu1 %v2381_v31 }
 0x3b9   :  { %v2278_v50 = vpack.c.bf16 %v1082_v46, %v1081_v47 }
 0x3bb   :  { %2279 = vmatpush3.bf16.msra.mxu1 %v2278_v50 }
 0x3bc   :  { %2280 = vmatprep.subr.bf16.mxu1 %v2381_v31 }
 0x3be   :  { %2028 = vmatmul.mubr.msk.f32.vlgmr.msra.gmra.mrb[8].mxu1 %vm58_vm1, %v1083_v51 }
 0x3bf   :  { %2282 = vmatpush3.bf16.msra.mxu1 %v2281_v52  ;;  %2062 = vmatprep.mubr.msk.f32.mxu1 %vm2382_vm2, %v2383_v32  ;;  %v1432_v52 = vld [vmem:[#allocation2] sm:$0xff] }
 0x3c0   :  { %2283 = vmatprep.subr.bf16.mxu1 %v2381_v31 }
 0x3c3   :  { %2285 = vmatpush3.bf16.msra.mxu1 %v2284_v55  ;;  %v2317_v55 = vpack.c.bf16 %v1433_v53, %v1432_v52 }
 0x3c4   :  { %2286 = vmatprep.subr.bf16.mxu1 %v2381_v31 }
 0x3c7   :  { %2288 = vmatpush3.bf16.msra.mxu1 %v2287_v58 }
 0x3c8   :  { %2289 = vmatprep.subr.bf16.mxu1 %v2381_v31 }
 0x3cb   :  { %2291 = vmatpush3.bf16.msra.mxu1 %v2290_v63 }
 0x3cc   :  { %2292 = vmatprep.subr.bf16.mxu1 %v2381_v31 }
 0x3cf   :  { %2294 = vmatpush3.bf16.msra.mxu1 %v2293_v2 }
 0x3d0   :  { %2295 = vmatprep.subr.bf16.mxu1 %v2381_v31 }
 0x3d3   :  { %2297 = vmatpush3.bf16.msra.mxu1 %v2296_v5 }
 0x3d4   :  { %2298 = vmatprep.subr.bf16.mxu1 %v2381_v31 }
 0x3d7   :  { %2300 = vmatpush3.bf16.msra.mxu1 %v2299_v8 }
 0x3d8   :  { %2301 = vmatprep.subr.bf16.mxu1 %v2381_v31 }
 0x3db   :  { %2303 = vmatpush3.bf16.msra.mxu1 %v2302_v11 }
 0x3dc   :  { %2304 = vmatprep.subr.bf16.mxu1 %v2381_v31 }
 0x491   :  { %v1153_v19 = vpop.f32.mrb[8].mxu1 }
 0x492   :  { %v2029_v21 = vpop.f32.mrb[9].mxu1  ;;  %2063 = vmatmul.mubr.f32.vlgmr.msra.gmra.mrb[10].mxu1 %v1153_v19 }
 0x493   :  { %2306 = vmatpush3.bf16.msra.mxu1 %v2305_v14  ;;  %2073 = vmatprep.mubr.msk.f32.mxu1 %vm2382_vm2, %v2383_v32 }
 0x494   :  { %2307 = vmatprep.subr.bf16.mxu1 %v2381_v31 }
 0x497   :  { %2309 = vmatpush3.bf16.msra.mxu1 %v2308_v22 }
 0x498   :  { %2310 = vmatprep.subr.bf16.mxu1 %v2381_v31 }
 0x49a   :  { %2074 = vmatmul.mubr.msk.f32.vlgmr.msra.gmra.mrb[12].mxu1 %vm58_vm1, %v1248_v27 }
 0x49b   :  { %2312 = vmatpush3.bf16.msra.mxu1 %v2311_v15  ;;  %2084 = vmatprep.mubr.msk.f32.mxu1 %vm2382_vm2, %v2383_v32 }
 0x49c   :  { %2313 = vmatprep.subr.bf16.mxu1 %v2381_v31 }
 0x49f   :  { %2315 = vmatpush3.bf16.msra.mxu1 %v2314_v26 }
 0x4a0   :  { %2316 = vmatprep.subr.bf16.mxu1 %v2381_v31 }
 0x565   :  { %v1243_v29 = vpop.f32.mrb[10].mxu1 }
 0x566   :  { %v1244_v30 = vadd.f32 %v1243_v29, %v1176_v20  ;;  %v2064_v33 = vpop.f32.mrb[11].mxu1 }
 0x568   :  { %v1247_v34 = vmax.f32 %v1244_v30, 0.0 }
 0x56a   :  { %2085 = vmatmul.mubr.msk.f32.vlgmr.msra.gmra.mrb[14].mxu1 %vm58_vm1, %v1247_v34 }
 0x56b   :  { %2095 = vmatprep.mubr.msk.f32.mxu1 %vm2382_vm2, %v2383_v32  ;;  %2318 = vmatpush3.bf16.msra.mxu1 %v2317_v55 }
 0x56c   :  { %2319 = vmatprep.subr.bf16.mxu1 %v2381_v31 }
 0x56d   :  { %v1326_v35 = vpop.f32.mrb[12].mxu1 }
 0x56e   :  { %v2075_v36 = vpop.f32.mrb[13].mxu1 }
 0x56f   :  { %2321 = vmatpush3.bf16.msra.mxu1 %v2320_v57 }
 0x63d   :  { %v1399_v39 = vpop.f32.mrb[14].mxu1 }
 0x63e   :  { %v1400_v40 = vadd.f32 %v1399_v39, %v1326_v35  ;;  %v2086_v41 = vpop.f32.mrb[15].mxu1 }
 0x640   :  { %v1407_v42 = vadd.f32 %v1406_v38, %v1400_v40 }
 0x642   :  { %2346 = vtanh.f32 %v1407_v42  ;;  %v1616_v44 = vmul.f32 -1.442695, %v1407_v42 }
 0x644   :  { %2348 = vpow2.f32 %v1616_v44 }
 0x64c   :  { %v2347_v43 = vpop.eup %2346 }
 0x64d   :  { %1417 = vrot.lane.b32.xlu0 %v2347_v43, %s2384_s6 }
 0x64e   :  { %v2349_v45 = vpop.eup %2348 }
 0x64f   :  { %v1411_v46 = vadd.f32 1.0, %v2349_v45 }
 0x651   :  { %2350 = vrcp.f32 %v1411_v46 }
 0x65b   :  { %v2351_v32 = vpop.eup %2350 }
 0x65c   :  { %v1415_v49 = vmul.f32 %v2351_v32, %v1248_v27 }
 0x6bf   :  { %v1418_v47 = vpop.permute.xlu0 %1417 }
 0x6c0   :  { %v1420_v48 = vmul.f32 %v2351_v32, %v1418_v47 }
 0x6c2   :  { %1422 = vrot.lane.b32.xlu0 %v1420_v48, %s2385_s9 }
 0x734   :  { %v1423_v50 = vpop.permute.xlu0 %1422 }
 0x735   :  { %v1425_v51 = vadd.f32 %v1423_v50, %v1415_v49 }
 0x737   :  { %2352 = vtanh.f32 %v1425_v51 }
 0x741   :  { %v2353_v58 = vpop.eup %2352 }
 0x742   :  { %1428 = vrot.lane.b32.xlu1 %v2353_v58, %s2384_s6 }
 0x7b4   :  { %v1429_v60 = vpop.permute.xlu1 %1428 }
 0x7b5   :  { %v1431_v62 = vmul.f32 %v2351_v32, %v1429_v60 }
 0x7b7   :  { %1517 = vrot.lane.b32.xlu0 %v1431_v62, %s2384_s6  ;;  %1441 = vrot.lane.b32.xlu1 %v1431_v62, %s2385_s9 }
 0x7bb   :  { %1523 = vrot.lane.b32.xlu1 %v1425_v51, %s2385_s9 }
 0x829   :  { %v1442_v63 = vpop.permute.xlu1 %1441  ;;  %v1518_v4 = vpop.permute.xlu0 %1517 }
 0x82a   :  { %2096 = vmatmul.mubr.msk.f32.vlgmr.msra.gmra.mrb[16].mxu1 %vm58_vm1, %v1442_v63 }
 0x82d   :  { %v1524_v5 = vpop.permute.xlu1 %1523 }
 0x8fd   :  { %v1511_v2 = vpop.f32.mrb[16].mxu1 }
 0x8fe   :  { %v1512_v3 = vadd.f32 %v1511_v2, %v1439_v1  ;;  %v2097_v31 = vpop.f32.mrb[17].mxu1 }
 0x900   :  { %1516 = vst.msk [vmem:[%s2930_s10] sm:$0x3] %vm1515_vm3, %v1512_v3 }
 0x901   :  { %1521 = vst.msk [vmem:[%s2930_s10] sm:$0x3] %vm1520_vm4, %v1518_v4 }
 0x902   :  { %1527 = vst.msk [vmem:[%s2930_s10] sm:$0x3] %vm1526_vm5, %v1524_v5 }
 0x903   :  { %1532 = vsyncpa [#allocation3], 1 }

</bundles_post_ra>
